<compile_context>
chip_gen: v5e
topology: v5e:2x2
jax: 0.10.0
libtpu: 0.0.40
codegen_flags: <defaults>
</compile_context>

<pallas_src>
import functools

import jax
import jax.numpy as jnp
from jax import lax
from jax.experimental import pallas as pl
from jax.experimental.pallas import tpu as pltpu


def _round_up(x, m):
    return ((x + m - 1) // m) * m


# ----------------------------------------------------------------------------
# Kernel bodies
# ----------------------------------------------------------------------------

def _hidden_layer(h, w, b, g, beta, use_ln, eps, cdt):
    """One hidden layer: Linear(H->H) + ReLU [+ LayerNorm].  h is f32, w is cdt."""
    h = jnp.dot(h.astype(cdt), w, preferred_element_type=jnp.float32)
    h = jnp.maximum(h + b, 0.0)
    if use_ln:
        mean = jnp.mean(h, axis=-1, keepdims=True)
        d = h - mean                                    # hoisted once
        var = jnp.mean(d * d, axis=-1, keepdims=True)   # two-pass form (stable)
        h = d * lax.rsqrt(var + eps) * g + beta         # rsqrt -> EUP slot
    return h


def _head(h, wout_row, bout, out_dtype):
    # Linear(H -> 1) as VPU multiply + XLU lane reduce (keeps the MXU off N=1).
    q = jnp.sum(h * wout_row, axis=-1, keepdims=True)
    return (q + bout).astype(out_dtype)


def _critic_kernel_resident(L, use_ln, eps, cdt, *refs):
    """All weights VMEM-resident; grid = (batch tiles,)."""
    refs = list(refs)
    s_ref, a_ref, w0s_ref, w0a_ref, b0_ref = refs[:5]
    k = 5
    wh_ref = bh_ref = g_ref = beta_ref = None
    if L > 0:
        wh_ref, bh_ref = refs[k], refs[k + 1]
        k += 2
        if use_ln:
            g_ref, beta_ref = refs[k], refs[k + 1]
            k += 2
    wout_ref, bout_ref, o_ref = refs[k], refs[k + 1], refs[k + 2]

    # First layer: split matmul replaces the concat:
    #   [s a] @ W0 == s @ W0[:S] + a @ W0[S:]   (two MXU dots, one f32 accumulator)
    h = jnp.dot(s_ref[...].astype(cdt), w0s_ref[...],
                preferred_element_type=jnp.float32)
    h = h + jnp.dot(a_ref[...].astype(cdt), w0a_ref[...],
                    preferred_element_type=jnp.float32)
    h = jnp.maximum(h + b0_ref[...], 0.0)

    if L > 0:
        def layer(l, h):
            g = g_ref[l] if use_ln else None
            beta = beta_ref[l] if use_ln else None
            return _hidden_layer(h, wh_ref[l], bh_ref[l], g, beta, use_ln, eps, cdt)

        if L <= 4:
            # Short stack: static unroll keeps the LLO scheduler's view flat.
            for l in range(L):
                h = layer(l, h)
        else:
            # Deep stack: bound live ranges / register pressure with fori_loop.
            h = lax.fori_loop(0, L, layer, h)

    o_ref[...] = _head(h, wout_ref[...], bout_ref[...], o_ref.dtype)


def _critic_kernel_stream(use_ln, eps, cdt, *refs):
    """One hidden layer's weights streamed per grid step; grid = (tiles, L)."""
    refs = list(refs)
    s_ref, a_ref, w0s_ref, w0a_ref, b0_ref = refs[:5]
    k = 5
    wh_ref, bh_ref = refs[k], refs[k + 1]
    k += 2
    g_ref = beta_ref = None
    if use_ln:
        g_ref, beta_ref = refs[k], refs[k + 1]
        k += 2
    wout_ref, bout_ref = refs[k], refs[k + 1]
    o_ref, h_ref = refs[k + 2], refs[k + 3]

    l = pl.program_id(1)

    @pl.when(l == 0)
    def _():
        h0 = jnp.dot(s_ref[...].astype(cdt), w0s_ref[...],
                     preferred_element_type=jnp.float32)
        h0 = h0 + jnp.dot(a_ref[...].astype(cdt), w0a_ref[...],
                          preferred_element_type=jnp.float32)
        h_ref[...] = jnp.maximum(h0 + b0_ref[...], 0.0)

    g = g_ref[0] if use_ln else None
    beta = beta_ref[0] if use_ln else None
    h_ref[...] = _hidden_layer(h_ref[...], wh_ref[0], bh_ref[0],
                               g, beta, use_ln, eps, cdt)

    @pl.when(l == pl.num_programs(1) - 1)
    def _():
        o_ref[...] = _head(h_ref[...], wout_ref[...], bout_ref[...], o_ref.dtype)


# ----------------------------------------------------------------------------
# Wrapper
# ----------------------------------------------------------------------------

def critic_forward(state, action, params, *, num_hidden_layers, use_ln,
                   eps=1e-5, tile_b=None, compute_dtype=jnp.bfloat16,
                   force_mode=None):
    """Pallas forward pass of the Critic Q-network.  Returns (B, 1) float32.

    compute_dtype: dtype of the matmul operands (weights + cast activations);
                   accumulation / ReLU / LayerNorm stay f32.
    force_mode:    None | "resident" | "stream" (overrides the VMEM heuristic).
    """
    B, S = state.shape
    A = action.shape[1]
    H = params["b0"].shape[-1]
    L = int(num_hidden_layers)
    cdt = jnp.dtype(compute_dtype)
    cd_bytes = cdt.itemsize

    # ---------------------------------------------------------------- VMEM budget
    try:
        vmem_cap = int(pltpu.get_tpu_info().vmem_capacity_bytes)
    except Exception:
        vmem_cap = 64 << 20            # per-TC VMEM floor across generations (v7x)
    budget = int(0.7 * vmem_cap)

    # Pallas allocates 2 buffers per input spec even with a constant index_map,
    # so all weight residency is accounted at 2x.
    n_ln = 2 * L if use_ln else 0
    small_w = 4 * ((1 + L + n_ln) * H + H + 1)              # biases / LN / head (f32)
    w_resident = 2 * (cd_bytes * (S * H + A * H + L * H * H) + small_w)
    w_stream = 2 * (cd_bytes * (S * H + A * H + H * H) + small_w)
    per_row = 4 * (2 * (S + A + 1) + 6 * H)                 # streamed tiles + live f32 temps
    headroom = 4 << 20

    # ---------------------------------------------------------------- mode choice
    if force_mode is None:
        mode = "resident"
        if L > 0 and (w_resident + 128 * per_row + headroom) > budget:
            mode = "stream"
    else:
        mode = force_mode
    if L == 0:
        mode = "resident"
    fixed = (w_resident if mode == "resident" else w_stream) + headroom

    # ---------------------------------------------------------------- batch tile
    if tile_b is None:
        b8 = _round_up(B, 8)
        max_fit = 8
        for t in (2048, 1024, 512, 256, 128, 64, 32, 16, 8):
            extra = 4 * t * H if mode == "stream" else 0    # h scratch
            if fixed + t * per_row + extra <= budget:
                max_fit = t
                break
        tile_b = min(b8, max_fit)
    assert tile_b % 8 == 0, "tile_b must be a multiple of 8 (f32 sublane)"

    B_pad = _round_up(B, tile_b)
    if B_pad != B:
        pad = B_pad - B
        state = jnp.pad(state, ((0, pad), (0, 0)))
        action = jnp.pad(action, ((0, pad), (0, 0)))
    n_tiles = B_pad // tile_b

    extra_scratch = 4 * tile_b * H if mode == "stream" else 0
    need = fixed + tile_b * per_row + extra_scratch
    vmem_limit = min(int(0.9 * vmem_cap), max(32 << 20, need))

    # ---------------------------------------------------------------- params (cast once)
    w0 = params["w0"]
    w0s = w0[:S].astype(cdt)                  # (S, H)
    w0a = w0[S:].astype(cdt)                  # (A, H)
    b0 = params["b0"].astype(jnp.float32)     # (1, H)
    wout = params["wout"].astype(jnp.float32)  # (1, H) -- VPU head, keep f32
    bout = params["bout"].astype(jnp.float32)  # (1, 1)

    # ---------------------------------------------------------------- cost estimate
    flops = 2 * B_pad * ((S + A) * H + L * H * H + H)
    transcendentals = B_pad * L if use_ln else 0
    bytes_accessed = (4 * B_pad * (S + A + 1)
                      + cd_bytes * (S * H + A * H + L * H * H)
                      + 4 * ((1 + L + n_ln) * H + H + 1))
    cost = pl.CostEstimate(flops=flops, transcendentals=transcendentals,
                           bytes_accessed=bytes_accessed)

    # ---------------------------------------------------------------- specs / call
    if mode == "resident":
        grid = (n_tiles,)
        c2 = lambda i: (0, 0)
        c3 = lambda i: (0, 0, 0)
        in_specs = [
            pl.BlockSpec((tile_b, S), lambda i: (i, 0)),   # state tile (streamed)
            pl.BlockSpec((tile_b, A), lambda i: (i, 0)),   # action tile (streamed)
            pl.BlockSpec((S, H), c2),                      # w0[:S]
            pl.BlockSpec((A, H), c2),                      # w0[S:]
            pl.BlockSpec((1, H), c2),                      # b0
        ]
        args = [state, action, w0s, w0a, b0]
        if L > 0:
            in_specs += [pl.BlockSpec((L, H, H), c3),      # wh (whole stack resident)
                         pl.BlockSpec((L, 1, H), c3)]      # bh
            args += [params["wh"].astype(cdt), params["bh"].astype(jnp.float32)]
            if use_ln:
                in_specs += [pl.BlockSpec((L, 1, H), c3),  # ln gamma
                             pl.BlockSpec((L, 1, H), c3)]  # ln beta
                args += [params["ln_g"].astype(jnp.float32),
                         params["ln_b"].astype(jnp.float32)]
        in_specs += [pl.BlockSpec((1, H), c2),             # wout (row form)
                     pl.BlockSpec((1, 1), c2)]             # bout
        args += [wout, bout]
        out_spec = pl.BlockSpec((tile_b, 1), lambda i: (i, 0))
        kernel = functools.partial(_critic_kernel_resident, L, use_ln, eps, cdt)
        scratch = []
        dims = ("parallel",)
    else:   # "stream": one (H, H) hidden layer per inner grid step
        grid = (n_tiles, L)
        c2 = lambda i, l: (0, 0)
        cl = lambda i, l: (l, 0, 0)
        in_specs = [
            pl.BlockSpec((tile_b, S), lambda i, l: (i, 0)),
            pl.BlockSpec((tile_b, A), lambda i, l: (i, 0)),
            pl.BlockSpec((S, H), c2),
            pl.BlockSpec((A, H), c2),
            pl.BlockSpec((1, H), c2),
            pl.BlockSpec((1, H, H), cl),                   # wh: layer l only
            pl.BlockSpec((1, 1, H), cl),                   # bh: layer l only
        ]
        args = [state, action, w0s, w0a, b0,
                params["wh"].astype(cdt), params["bh"].astype(jnp.float32)]
        if use_ln:
            in_specs += [pl.BlockSpec((1, 1, H), cl), pl.BlockSpec((1, 1, H), cl)]
            args += [params["ln_g"].astype(jnp.float32),
                     params["ln_b"].astype(jnp.float32)]
        in_specs += [pl.BlockSpec((1, H), c2), pl.BlockSpec((1, 1), c2)]
        args += [wout, bout]
        out_spec = pl.BlockSpec((tile_b, 1), lambda i, l: (i, 0))
        kernel = functools.partial(_critic_kernel_stream, use_ln, eps, cdt)
        scratch = [pltpu.VMEM((tile_b, H), jnp.float32)]   # h, resident across l
        dims = ("parallel", "arbitrary")

    out = pl.pallas_call(
        kernel,
        out_shape=jax.ShapeDtypeStruct((B_pad, 1), jnp.float32),
        grid=grid,
        in_specs=in_specs,
        out_specs=out_spec,
        scratch_shapes=scratch,
        compiler_params=pltpu.CompilerParams(
            dimension_semantics=dims,
            vmem_limit_bytes=vmem_limit),
        cost_estimate=cost,
    )(*args)

    return out[:B] if B_pad != B else out


# ----------------------------------------------------------------------------
# Param init + pure-JAX reference
# ----------------------------------------------------------------------------

def init_params(key, state_dim, action_dim, num_hidden_layers, hidden_layer_dim):
    """Deterministic PyTorch-Linear-style init (uniform +-1/sqrt(fan_in))."""
    H = hidden_layer_dim
    in0 = state_dim + action_dim
    L = num_hidden_layers
    ks = jax.random.split(key, 3)

    def lin(k, fan_in, fan_out):
        kw, kb = jax.random.split(k)
        bound = 1.0 / jnp.sqrt(fan_in)
        w = jax.random.uniform(kw, (fan_in, fan_out), jnp.float32, -bound, bound)
        b = jax.random.uniform(kb, (1, fan_out), jnp.float32, -bound, bound)
        return w, b

    w0, b0 = lin(ks[0], in0, H)
    params = {"w0": w0, "b0": b0}
    if L > 0:
        hk = jax.random.split(ks[1], L)
        ws, bs = [], []
        for l in range(L):
            w, b = lin(hk[l], H, H)
            ws.append(w)
            bs.append(b)
        params["wh"] = jnp.stack(ws)                      # (L, H, H)
        params["bh"] = jnp.stack(bs).reshape(L, 1, H)
        params["ln_g"] = jnp.ones((L, 1, H), jnp.float32)  # PyTorch defaults
        params["ln_b"] = jnp.zeros((L, 1, H), jnp.float32)
    wout_col, bout = lin(ks[2], H, 1)
    params["wout"] = wout_col.reshape(1, H)               # row form for lane-reduce head
    params["bout"] = bout
    return params


def critic_forward_ref(state, action, params, *, num_hidden_layers, use_ln, eps=1e-5):
    """Pure-JAX f32 reference (matches the PyTorch module)."""
    h = jnp.concatenate([state, action], axis=1)
    h = jnp.maximum(h @ params["w0"] + params["b0"], 0.0)
    for l in range(num_hidden_layers):
        h = jnp.maximum(h @ params["wh"][l] + params["bh"][l], 0.0)
        if use_ln:
            mean = jnp.mean(h, axis=-1, keepdims=True)
            var = jnp.mean((h - mean) ** 2, axis=-1, keepdims=True)
            h = (h - mean) * lax.rsqrt(var + eps) * params["ln_g"][l] + params["ln_b"][l]
    return h @ params["wout"].T + params["bout"]


# ----------------------------------------------------------------------------
# Self-test
# ----------------------------------------------------------------------------

def _check(name, *, B, L, use_ln, cdtype, tol, tile_b=None, force_mode=None,
           S=24, A=8, H=32):
    key = jax.random.PRNGKey(0)
    kp, ks, ka = jax.random.split(key, 3)
    params = init_params(kp, S, A, L, H)
    state = jax.random.normal(ks, (B, S), jnp.float32)
    action = jax.random.normal(ka, (B, A), jnp.float32)
    q = critic_forward(state, action, params, num_hidden_layers=L, use_ln=use_ln,
                       tile_b=tile_b, compute_dtype=cdtype, force_mode=force_mode)
    q = jax.block_until_ready(q)
    q_ref = critic_forward_ref(state, action, params,
                               num_hidden_layers=L, use_ln=use_ln)
    assert q.shape == (B, 1), (name, q.shape)
    err = float(jnp.max(jnp.abs(q - q_ref)))
    assert jnp.allclose(q, q_ref, atol=tol, rtol=tol), (name, err)


if __name__ == "__main__":
    # Small shapes consistent with the module: state=(B, 24), action=(B, 8), H=32.
    # Exact-f32 path, resident weights, single tile.
    _check("resident_f32", B=8, L=2, use_ln=True, cdtype=jnp.float32, tol=1e-3)
    # Default bf16-matmul path (f32 accumulation).
    _check("resident_bf16", B=8, L=2, use_ln=True, cdtype=jnp.bfloat16, tol=5e-2)
    # Multi-tile grid + batch padding (B=50, tile_b=8 -> 7 tiles, 6 padded rows).
    _check("multi_tile_pad", B=50, L=2, use_ln=True, cdtype=jnp.bfloat16, tol=5e-2,
           tile_b=8)
    # Per-layer weight-streaming path (the v7x large-H fallback), validated in f32.
    _check("stream_f32", B=16, L=2, use_ln=True, cdtype=jnp.float32, tol=1e-3,
           force_mode="stream")
    # No hidden layers (first Linear -> ReLU -> head only).
    _check("no_hidden", B=8, L=0, use_ln=False, cdtype=jnp.float32, tol=1e-3)
    # Deep stack exercises the lax.fori_loop hidden-layer path.
    _check("deep_fori", B=8, L=6, use_ln=True, cdtype=jnp.float32, tol=1e-3)
    print("KERNEL_OK")
</pallas_src>

<mosaic_0001>
module attributes {stable_mosaic.version = 11 : i64} {
  func.func @_critic_kernel_resident(%arg0: i32, %arg1: memref<8x24xf32, #tpu.memory_space<vmem>>, %arg2: memref<8x8xf32, #tpu.memory_space<vmem>>, %arg3: memref<24x32xf32, #tpu.memory_space<vmem>>, %arg4: memref<8x32xf32, #tpu.memory_space<vmem>>, %arg5: memref<1x32xf32, #tpu.memory_space<vmem>>, %arg6: memref<2x32x32xf32, #tpu.memory_space<vmem>>, %arg7: memref<2x1x32xf32, #tpu.memory_space<vmem>>, %arg8: memref<2x1x32xf32, #tpu.memory_space<vmem>>, %arg9: memref<2x1x32xf32, #tpu.memory_space<vmem>>, %arg10: memref<1x32xf32, #tpu.memory_space<vmem>>, %arg11: memref<1x1xf32, #tpu.memory_space<vmem>>, %arg12: memref<8x1xf32, #tpu.memory_space<vmem>>) attributes {dimension_semantics = [#tpu.dimension_semantics<parallel>], iteration_bounds = array<i64: 1>, scalar_prefetch = 0 : i64, scratch_operands = 0 : i64, tpu.core_type = #tpu.core_type<tc>, window_params = [{transform_indices = @transform_0, window_bounds = array<i64: 8, 24>}, {transform_indices = @transform_1, window_bounds = array<i64: 8, 8>}, {pipeline_mode = #tpu.pipeline_mode<synchronous>, transform_indices = @transform_2, window_bounds = array<i64: 24, 32>}, {pipeline_mode = #tpu.pipeline_mode<synchronous>, transform_indices = @transform_3, window_bounds = array<i64: 8, 32>}, {pipeline_mode = #tpu.pipeline_mode<synchronous>, transform_indices = @transform_4, window_bounds = array<i64: 1, 32>}, {pipeline_mode = #tpu.pipeline_mode<synchronous>, transform_indices = @transform_5, window_bounds = array<i64: 2, 32, 32>}, {pipeline_mode = #tpu.pipeline_mode<synchronous>, transform_indices = @transform_6, window_bounds = array<i64: 2, 1, 32>}, {pipeline_mode = #tpu.pipeline_mode<synchronous>, transform_indices = @transform_7, window_bounds = array<i64: 2, 1, 32>}, {pipeline_mode = #tpu.pipeline_mode<synchronous>, transform_indices = @transform_8, window_bounds = array<i64: 2, 1, 32>}, {pipeline_mode = #tpu.pipeline_mode<synchronous>, transform_indices = @transform_9, window_bounds = array<i64: 1, 32>}, {pipeline_mode = #tpu.pipeline_mode<synchronous>, transform_indices = @transform_10, window_bounds = array<i64: 1, 1>}, {transform_indices = @transform_11, window_bounds = array<i64: 8, 1>}]} {
    %c0 = arith.constant 0 : index
    %c0_0 = arith.constant 0 : index
    %0 = vector.load %arg1[%c0, %c0_0] : memref<8x24xf32, #tpu.memory_space<vmem>>, vector<8x24xf32>
    %c0_1 = arith.constant 0 : index
    %c0_2 = arith.constant 0 : index
    %1 = vector.load %arg3[%c0_1, %c0_2] : memref<24x32xf32, #tpu.memory_space<vmem>>, vector<24x32xf32>
    %cst = arith.constant dense<0.000000e+00> : vector<8x32xf32>
    %2 = tpu.matmul %0, %1, %cst {dimension_numbers = #tpu.dot_dimension_numbers<[1], [0], [0], [1], [0, 0, 1, 1], [], []>} : vector<8x24xf32>, vector<24x32xf32>, vector<8x32xf32> -> vector<8x32xf32>
    %c0_3 = arith.constant 0 : index
    %c0_4 = arith.constant 0 : index
    %3 = vector.load %arg2[%c0_3, %c0_4] : memref<8x8xf32, #tpu.memory_space<vmem>>, vector<8x8xf32>
    %c0_5 = arith.constant 0 : index
    %c0_6 = arith.constant 0 : index
    %4 = vector.load %arg4[%c0_5, %c0_6] : memref<8x32xf32, #tpu.memory_space<vmem>>, vector<8x32xf32>
    %cst_7 = arith.constant dense<0.000000e+00> : vector<8x32xf32>
    %5 = tpu.matmul %3, %4, %cst_7 {dimension_numbers = #tpu.dot_dimension_numbers<[1], [0], [0], [1], [0, 0, 1, 1], [], []>} : vector<8x8xf32>, vector<8x32xf32>, vector<8x32xf32> -> vector<8x32xf32>
    %6 = arith.addf %2, %5 : vector<8x32xf32>
    %c0_8 = arith.constant 0 : index
    %c0_9 = arith.constant 0 : index
    %7 = vector.load %arg5[%c0_8, %c0_9] : memref<1x32xf32, #tpu.memory_space<vmem>>, vector<1x32xf32>
    %8 = vector.broadcast %7 : vector<1x32xf32> to vector<8x32xf32>
    %9 = arith.addf %6, %8 : vector<8x32xf32>
    %cst_10 = arith.constant 0.000000e+00 : f32
    %10 = vector.broadcast %cst_10 : f32 to vector<8x32xf32>
    %11 = arith.maximumf %9, %10 : vector<8x32xf32>
    %c0_11 = arith.constant 0 : index
    %c0_12 = arith.constant 0 : index
    %c0_13 = arith.constant 0 : index
    %12 = vector.load %arg8[%c0_11, %c0_12, %c0_13] : memref<2x1x32xf32, #tpu.memory_space<vmem>>, vector<1x1x32xf32>
    %13 = vector.shape_cast %12 : vector<1x1x32xf32> to vector<1x32xf32>
    %c0_14 = arith.constant 0 : index
    %c0_15 = arith.constant 0 : index
    %c0_16 = arith.constant 0 : index
    %14 = vector.load %arg9[%c0_14, %c0_15, %c0_16] : memref<2x1x32xf32, #tpu.memory_space<vmem>>, vector<1x1x32xf32>
    %15 = vector.shape_cast %14 : vector<1x1x32xf32> to vector<1x32xf32>
    %c0_17 = arith.constant 0 : index
    %c0_18 = arith.constant 0 : index
    %c0_19 = arith.constant 0 : index
    %16 = vector.load %arg6[%c0_17, %c0_18, %c0_19] : memref<2x32x32xf32, #tpu.memory_space<vmem>>, vector<1x32x32xf32>
    %17 = vector.shape_cast %16 : vector<1x32x32xf32> to vector<32x32xf32>
    %c0_20 = arith.constant 0 : index
    %c0_21 = arith.constant 0 : index
    %c0_22 = arith.constant 0 : index
    %18 = vector.load %arg7[%c0_20, %c0_21, %c0_22] : memref<2x1x32xf32, #tpu.memory_space<vmem>>, vector<1x1x32xf32>
    %19 = vector.shape_cast %18 : vector<1x1x32xf32> to vector<1x32xf32>
    %cst_23 = arith.constant dense<0.000000e+00> : vector<8x32xf32>
    %20 = tpu.matmul %11, %17, %cst_23 {dimension_numbers = #tpu.dot_dimension_numbers<[1], [0], [0], [1], [0, 0, 1, 1], [], []>} : vector<8x32xf32>, vector<32x32xf32>, vector<8x32xf32> -> vector<8x32xf32>
    %21 = vector.broadcast %19 : vector<1x32xf32> to vector<8x32xf32>
    %22 = arith.addf %20, %21 : vector<8x32xf32>
    %cst_24 = arith.constant 0.000000e+00 : f32
    %23 = vector.broadcast %cst_24 : f32 to vector<8x32xf32>
    %24 = arith.maximumf %22, %23 : vector<8x32xf32>
    %cst_25 = arith.constant dense<0.000000e+00> : vector<8xf32>
    %25 = vector.multi_reduction <add>, %24, %cst_25 [1] : vector<8x32xf32> to vector<8xf32>
    %26 = vector.shape_cast %25 : vector<8xf32> to vector<8x1xf32>
    %cst_26 = arith.constant 3.200000e+01 : f32
    %27 = vector.broadcast %cst_26 : f32 to vector<8x1xf32>
    %28 = arith.divf %26, %27 : vector<8x1xf32>
    %29 = vector.broadcast %28 : vector<8x1xf32> to vector<8x32xf32>
    %30 = arith.subf %24, %29 : vector<8x32xf32>
    %31 = arith.mulf %30, %30 : vector<8x32xf32>
    %cst_27 = arith.constant dense<0.000000e+00> : vector<8xf32>
    %32 = vector.multi_reduction <add>, %31, %cst_27 [1] : vector<8x32xf32> to vector<8xf32>
    %33 = vector.shape_cast %32 : vector<8xf32> to vector<8x1xf32>
    %cst_28 = arith.constant 3.200000e+01 : f32
    %34 = vector.broadcast %cst_28 : f32 to vector<8x1xf32>
    %35 = arith.divf %33, %34 : vector<8x1xf32>
    %cst_29 = arith.constant 9.99999974E-6 : f32
    %36 = vector.broadcast %cst_29 : f32 to vector<8x1xf32>
    %37 = arith.addf %35, %36 : vector<8x1xf32>
    %38 = math.rsqrt %37 : vector<8x1xf32>
    %39 = vector.broadcast %38 : vector<8x1xf32> to vector<8x32xf32>
    %40 = arith.mulf %30, %39 : vector<8x32xf32>
    %41 = vector.broadcast %13 : vector<1x32xf32> to vector<8x32xf32>
    %42 = arith.mulf %40, %41 : vector<8x32xf32>
    %43 = vector.broadcast %15 : vector<1x32xf32> to vector<8x32xf32>
    %44 = arith.addf %42, %43 : vector<8x32xf32>
    %c1 = arith.constant 1 : index
    %c0_30 = arith.constant 0 : index
    %c0_31 = arith.constant 0 : index
    %45 = vector.load %arg8[%c1, %c0_30, %c0_31] : memref<2x1x32xf32, #tpu.memory_space<vmem>>, vector<1x1x32xf32>
    %46 = vector.shape_cast %45 : vector<1x1x32xf32> to vector<1x32xf32>
    %c1_32 = arith.constant 1 : index
    %c0_33 = arith.constant 0 : index
    %c0_34 = arith.constant 0 : index
    %47 = vector.load %arg9[%c1_32, %c0_33, %c0_34] : memref<2x1x32xf32, #tpu.memory_space<vmem>>, vector<1x1x32xf32>
    %48 = vector.shape_cast %47 : vector<1x1x32xf32> to vector<1x32xf32>
    %c1_35 = arith.constant 1 : index
    %c0_36 = arith.constant 0 : index
    %c0_37 = arith.constant 0 : index
    %49 = vector.load %arg6[%c1_35, %c0_36, %c0_37] : memref<2x32x32xf32, #tpu.memory_space<vmem>>, vector<1x32x32xf32>
    %50 = vector.shape_cast %49 : vector<1x32x32xf32> to vector<32x32xf32>
    %c1_38 = arith.constant 1 : index
    %c0_39 = arith.constant 0 : index
    %c0_40 = arith.constant 0 : index
    %51 = vector.load %arg7[%c1_38, %c0_39, %c0_40] : memref<2x1x32xf32, #tpu.memory_space<vmem>>, vector<1x1x32xf32>
    %52 = vector.shape_cast %51 : vector<1x1x32xf32> to vector<1x32xf32>
    %cst_41 = arith.constant dense<0.000000e+00> : vector<8x32xf32>
    %53 = tpu.matmul %44, %50, %cst_41 {dimension_numbers = #tpu.dot_dimension_numbers<[1], [0], [0], [1], [0, 0, 1, 1], [], []>} : vector<8x32xf32>, vector<32x32xf32>, vector<8x32xf32> -> vector<8x32xf32>
    %54 = vector.broadcast %52 : vector<1x32xf32> to vector<8x32xf32>
    %55 = arith.addf %53, %54 : vector<8x32xf32>
    %cst_42 = arith.constant 0.000000e+00 : f32
    %56 = vector.broadcast %cst_42 : f32 to vector<8x32xf32>
    %57 = arith.maximumf %55, %56 : vector<8x32xf32>
    %cst_43 = arith.constant dense<0.000000e+00> : vector<8xf32>
    %58 = vector.multi_reduction <add>, %57, %cst_43 [1] : vector<8x32xf32> to vector<8xf32>
    %59 = vector.shape_cast %58 : vector<8xf32> to vector<8x1xf32>
    %cst_44 = arith.constant 3.200000e+01 : f32
    %60 = vector.broadcast %cst_44 : f32 to vector<8x1xf32>
    %61 = arith.divf %59, %60 : vector<8x1xf32>
    %62 = vector.broadcast %61 : vector<8x1xf32> to vector<8x32xf32>
    %63 = arith.subf %57, %62 : vector<8x32xf32>
    %64 = arith.mulf %63, %63 : vector<8x32xf32>
    %cst_45 = arith.constant dense<0.000000e+00> : vector<8xf32>
    %65 = vector.multi_reduction <add>, %64, %cst_45 [1] : vector<8x32xf32> to vector<8xf32>
    %66 = vector.shape_cast %65 : vector<8xf32> to vector<8x1xf32>
    %cst_46 = arith.constant 3.200000e+01 : f32
    %67 = vector.broadcast %cst_46 : f32 to vector<8x1xf32>
    %68 = arith.divf %66, %67 : vector<8x1xf32>
    %cst_47 = arith.constant 9.99999974E-6 : f32
    %69 = vector.broadcast %cst_47 : f32 to vector<8x1xf32>
    %70 = arith.addf %68, %69 : vector<8x1xf32>
    %71 = math.rsqrt %70 : vector<8x1xf32>
    %72 = vector.broadcast %71 : vector<8x1xf32> to vector<8x32xf32>
    %73 = arith.mulf %63, %72 : vector<8x32xf32>
    %74 = vector.broadcast %46 : vector<1x32xf32> to vector<8x32xf32>
    %75 = arith.mulf %73, %74 : vector<8x32xf32>
    %76 = vector.broadcast %48 : vector<1x32xf32> to vector<8x32xf32>
    %77 = arith.addf %75, %76 : vector<8x32xf32>
    %c0_48 = arith.constant 0 : index
    %c0_49 = arith.constant 0 : index
    %78 = vector.load %arg10[%c0_48, %c0_49] : memref<1x32xf32, #tpu.memory_space<vmem>>, vector<1x32xf32>
    %c0_50 = arith.constant 0 : index
    %c0_51 = arith.constant 0 : index
    %79 = vector.load %arg11[%c0_50, %c0_51] : memref<1x1xf32, #tpu.memory_space<vmem>>, vector<1x1xf32>
    %80 = vector.broadcast %78 : vector<1x32xf32> to vector<8x32xf32>
    %81 = arith.mulf %77, %80 : vector<8x32xf32>
    %cst_52 = arith.constant dense<0.000000e+00> : vector<8xf32>
    %82 = vector.multi_reduction <add>, %81, %cst_52 [1] : vector<8x32xf32> to vector<8xf32>
    %83 = vector.shape_cast %82 : vector<8xf32> to vector<8x1xf32>
    %84 = vector.broadcast %79 : vector<1x1xf32> to vector<8x1xf32>
    %85 = arith.addf %83, %84 : vector<8x1xf32>
    %c0_53 = arith.constant 0 : index
    %c0_54 = arith.constant 0 : index
    %86 = vector.load %arg12[%c0_53, %c0_54] : memref<8x1xf32, #tpu.memory_space<vmem>>, vector<8x1xf32>
    tpu.vector_store %arg12[%c0_53, %c0_54], %85 {strides = array<i32>} : memref<8x1xf32, #tpu.memory_space<vmem>>, vector<8x1xf32>,
    return
  }
  func.func @transform_0(%arg0: i32) -> (i32, i32) {
    %c0_i32 = arith.constant 0 : i32
    %c0_i32_0 = arith.constant 0 : i32
    return %arg0, %c0_i32 : i32, i32
  }
  func.func @transform_1(%arg0: i32) -> (i32, i32) {
    %c0_i32 = arith.constant 0 : i32
    %c0_i32_0 = arith.constant 0 : i32
    return %arg0, %c0_i32 : i32, i32
  }
  func.func @transform_2(%arg0: i32) -> (i32, i32) {
    %c0_i32 = arith.constant 0 : i32
    %c0_i32_0 = arith.constant 0 : i32
    %c0_i32_1 = arith.constant 0 : i32
    return %c0_i32, %c0_i32_0 : i32, i32
  }
  func.func @transform_3(%arg0: i32) -> (i32, i32) {
    %c0_i32 = arith.constant 0 : i32
    %c0_i32_0 = arith.constant 0 : i32
    %c0_i32_1 = arith.constant 0 : i32
    return %c0_i32, %c0_i32_0 : i32, i32
  }
  func.func @transform_4(%arg0: i32) -> (i32, i32) {
    %c0_i32 = arith.constant 0 : i32
    %c0_i32_0 = arith.constant 0 : i32
    %c0_i32_1 = arith.constant 0 : i32
    return %c0_i32, %c0_i32_0 : i32, i32
  }
  func.func @transform_5(%arg0: i32) -> (i32, i32, i32) {
    %c0_i32 = arith.constant 0 : i32
    %c0_i32_0 = arith.constant 0 : i32
    %c0_i32_1 = arith.constant 0 : i32
    %c0_i32_2 = arith.constant 0 : i32
    return %c0_i32, %c0_i32_0, %c0_i32_1 : i32, i32, i32
  }
  func.func @transform_6(%arg0: i32) -> (i32, i32, i32) {
    %c0_i32 = arith.constant 0 : i32
    %c0_i32_0 = arith.constant 0 : i32
    %c0_i32_1 = arith.constant 0 : i32
    %c0_i32_2 = arith.constant 0 : i32
    return %c0_i32, %c0_i32_0, %c0_i32_1 : i32, i32, i32
  }
  func.func @transform_7(%arg0: i32) -> (i32, i32, i32) {
    %c0_i32 = arith.constant 0 : i32
    %c0_i32_0 = arith.constant 0 : i32
    %c0_i32_1 = arith.constant 0 : i32
    %c0_i32_2 = arith.constant 0 : i32
    return %c0_i32, %c0_i32_0, %c0_i32_1 : i32, i32, i32
  }
  func.func @transform_8(%arg0: i32) -> (i32, i32, i32) {
    %c0_i32 = arith.constant 0 : i32
    %c0_i32_0 = arith.constant 0 : i32
    %c0_i32_1 = arith.constant 0 : i32
    %c0_i32_2 = arith.constant 0 : i32
    return %c0_i32, %c0_i32_0, %c0_i32_1 : i32, i32, i32
  }
  func.func @transform_9(%arg0: i32) -> (i32, i32) {
    %c0_i32 = arith.constant 0 : i32
    %c0_i32_0 = arith.constant 0 : i32
    %c0_i32_1 = arith.constant 0 : i32
    return %c0_i32, %c0_i32_0 : i32, i32
  }
  func.func @transform_10(%arg0: i32) -> (i32, i32) {
    %c0_i32 = arith.constant 0 : i32
    %c0_i32_0 = arith.constant 0 : i32
    %c0_i32_1 = arith.constant 0 : i32
    return %c0_i32, %c0_i32_0 : i32, i32
  }
  func.func @transform_11(%arg0: i32) -> (i32, i32) {
    %c0_i32 = arith.constant 0 : i32
    %c0_i32_0 = arith.constant 0 : i32
    return %arg0, %c0_i32 : i32, i32
  }
}

</mosaic_0001>

<bundles_post_ra>
// kernel: tpu_custom_call.1
= control target key start
LH: loop header
LB: loop body
LE: loop exit
PB: predicated region body
PF: predicated region fallthrough
CT: control target
= control target key end

     0   :  { %s653_s0 = inlined_call_operand.hbm [shape: f32[8,24], index: 0, kind: input, shape index: {}]   ;;  %s654_s1 = inlined_call_operand.hbm [shape: f32[8,8], index: 1, kind: input, shape index: {}]   ;;  %s655_s2 = inlined_call_operand.hbm [shape: f32[24,32], index: 2, kind: input, shape index: {}]   ;;  %s656_s3 = inlined_call_operand.hbm [shape: f32[8,32], index: 3, kind: input, shape index: {}]   ;;  %s657_s4 = inlined_call_operand.hbm [shape: f32[1,32], index: 4, kind: input, shape index: {}]   ;;  %s658_s5 = inlined_call_operand.hbm [shape: f32[2,32,32], index: 5, kind: input, shape index: {}]   ;;  %s659_s6 = inlined_call_operand.vmem [shape: f32[2,1,32], index: 6, kind: input, shape index: {}]   ;;  %s660_s7 = inlined_call_operand.vmem [shape: f32[2,1,32], index: 7, kind: input, shape index: {}]   ;;  %s661_s8 = inlined_call_operand.vmem [shape: f32[2,1,32], index: 8, kind: input, shape index: {}]   ;;  %s662_s9 = inlined_call_operand.vmem [shape: f32[1,32], index: 9, kind: input, shape index: {}]   ;;  %s663_s10 = inlined_call_operand.<no memory space> [shape: f32[1,1], index: 10, kind: input, shape index: {}]   ;;  %s664_s11 = inlined_call_operand.vmem [shape: f32[8,1], index: 11, kind: output, shape index: {}]  }
   0x1   :  { %v16_v0 = vstv %s663_s10 }
   0x2   :  { %17 = vst [vmem:[#allocation2] sm:$0x1] %v16_v0 }
   0x3   :  { %18 = vsyncpa [#allocation4], 0 }
   0x4   :  { %19 = vsyncpa [#allocation6], 0 }
   0x5   :  { %20 = vsyncpa [#allocation9], 0  ;;  %s38_s21 = sshll.u32 %s654_s1, 4  ;;  %s39_s21 = int_to_ptr.hbm [resolvable:$true] %s38_s21 }
   0x6   :  { %21 = vsyncpa [#allocation12], 0  ;;  %s532_s22 = smov [#allocation5]   ;;  %s62_s26 = sshll.u32 %s656_s3, 4  ;;  %s63_s26 = int_to_ptr.hbm [resolvable:$true] %s62_s26 }
   0x7   :  { %s40_s23 = sshll.u32 %s532_s22, 4  ;;  %s533_s10 = smov [#allocation8]   ;;  %s41_s23 = int_to_ptr.vmem [resolvable:$true] %s40_s23 }
   0x8   :  { %43 = dma.hbm_to_vmem [thread:$0]  %s39_s21, 128, %s41_s23, [#allocation6]  }
   0x9   :  { %s64_s27 = sshll.u32 %s533_s10, 4  ;;  %s27_s30 = sshll.u32 %s653_s0, 4  ;;  %s65_s27 = int_to_ptr.vmem [resolvable:$true] %s64_s27  ;;  %s28_s30 = int_to_ptr.hbm [resolvable:$true] %s27_s30 }
   0xa   :  { %67 = dma.hbm_to_vmem [thread:$0]  %s63_s26, 128, %s65_s27, [#allocation9]  }
   0xb   :  { %s48_s13 = sshll.u32 %s655_s2, 4  ;;  %s534_s14 = smov [#allocation3]   ;;  %s49_s13 = int_to_ptr.hbm [resolvable:$true] %s48_s13 }
   0xc   :  { %s29_s15 = sshll.u32 %s534_s14, 4  ;;  %s535_s3 = smov [#allocation7]   ;;  %s30_s15 = int_to_ptr.vmem [resolvable:$true] %s29_s15 }
   0xd   :  { %32 = dma.hbm_to_vmem [thread:$0]  %s28_s30, 128, %s30_s15, [#allocation4]  }
   0xe   :  { %s50_s16 = sshll.u32 %s535_s3, 4  ;;  %s536_s17 = smov 128   ;;  %s51_s16 = int_to_ptr.vmem [resolvable:$true] %s50_s16 }
   0xf   :  { %s537_s18 = smov 8   ;;  %s73_s20 = sshll.u32 %s657_s4, 4  ;;  %s74_s20 = int_to_ptr.hbm [resolvable:$true] %s73_s20 }
  0x10   :  { %56 = dma.hbm_to_vmem [thread:$0]  %s49_s13, 384, %s51_s16, [#allocation6], %s536_s17, %s536_s17, %s537_s18  }
  0x11   :  { %s538_s21 = smov [#allocation10]   ;;  %s83_s24 = sshll.u32 %s658_s5, 4  ;;  %s84_s24 = int_to_ptr.hbm [resolvable:$true] %s83_s24 }
  0x12   :  { %s75_s22 = sshll.u32 %s538_s21, 4  ;;  %s539_s25 = smov [#allocation11]   ;;  %s76_s22 = int_to_ptr.vmem [resolvable:$true] %s75_s22 }
  0x13   :  { %78 = dma.hbm_to_vmem [thread:$0]  %s74_s20, 16, %s76_s22, [#allocation9]  }
  0x14   :  { %s85_s26 = sshll.u32 %s539_s25, 4  ;;  %s86_s26 = int_to_ptr.vmem [resolvable:$true] %s85_s26 }
  0x15   :  { %91 = dma.hbm_to_vmem [thread:$0]  %s84_s24, 1024, %s86_s26, [#allocation12], %s536_s17, %s536_s17, %s537_s18  }
  0x16   :  { %524 = dma.done.wait [#allocation4], 128  }
  0x17   :  { %525 = vsyncadd [#allocation4], 4294967168 }
  0x18   :  { %526 = dma.done.wait [#allocation6], 512  }
  0x19   :  { %527 = vsyncadd [#allocation6], 4294966784 }
  0x1a   :  { %528 = dma.done.wait [#allocation9], 144  }
  0x1b   :  { %529 = vsyncadd [#allocation9], 4294967152 }
  0x1c   :  { %530 = dma.done.wait [#allocation12], 1024  }
  0x1d   :  { %531 = vsyncadd [#allocation12], 4294966272  ;;  %vm132_vm0 = vcmask 64512   ;;  %v129_v1 = vld [vmem:[#allocation7 + $0x10] sm:$0xff]  ;;  %v128_v2 = vld [vmem:[#allocation7 + $0x8] sm:$0xff]  ;;  %vm156_vm1 = vcmask 195584  }
  0x1e   :  { %v131_v3 = vld [vmem:[#allocation8] sm:$0xff]  ;;  %173 = vmatpush.msra.mxu1 %v129_v1  ;;  %v127_v4 = vld [vmem:[#allocation7] sm:$0xff]  ;;  %v126_v6 = vld [vmem:[#allocation3] sm:$0xff]  ;;  %vm196_vm2 = vcmask 261120   ;;  %v540_v22 = vmov 32.0   ;;  %vm339_vm10 = vcmask 7168  }
  0x1f   :  { %151 = vmatpush.msra.mxu0 %v131_v3  ;;  %v130_v5 = vld [vmem:[#allocation5] sm:$0xff]  ;;  %v189_v9 = vld [vmem:[#allocation11 + $0x8] sm:$0xff]  ;;  %v188_v10 = vld [vmem:[#allocation11] sm:$0xff]  ;;  %374 = vrcp.f32 %v540_v22 }
  0x20   :  { %349 = vmatmul.msk.f32.vlgmr.msra.gmra.mxu0 %vm132_vm0, %v130_v5  ;;  %174 = vmatpush.msra.mxu1 %v128_v2  ;;  %v191_v7 = vld [vmem:[#allocation11 + $0x18] sm:$0xff]  ;;  %v190_v8 = vld [vmem:[#allocation11 + $0x10] sm:$0xff]  ;;  %v366_v17 = vld [vmem:[%s659_s6] ss:$0 sm:$0xff] }
  0x21   :  { %212 = vmatpush.msra.mxu2 %v191_v7  ;;  %v365_v12 = vld [vmem:[#allocation10] ss:$0 sm:$0xff]  ;;  %v265_v35 = vld [vmem:[#allocation11 + $0x30] sm:$0xff]  ;;  %v264_v36 = vld [vmem:[#allocation11 + $0x28] sm:$0xff] }
  0x22   :  { %175 = vmatpush.msra.mxu1 %v127_v4  ;;  %v266_v34 = vld [vmem:[#allocation11 + $0x38] sm:$0xff]  ;;  %v263_v37 = vld [vmem:[#allocation11 + $0x20] sm:$0xff]  ;;  %v367_v47 = vld [vmem:[%s660_s7] ss:$0 sm:$0xff] }
  0x23   :  { %350 = vmatmul.msk.f32.vlgmr.msra.gmra.mxu1 %vm156_vm1, %v126_v6  ;;  %213 = vmatpush.msra.mxu2 %v190_v8  ;;  %v368_v50 = vld [vmem:[%s661_s8] ss:$0 sm:$0xff]  ;;  %v369_v53 = vld [vmem:[%s659_s6 + $0x1] ss:$0 sm:$0xff] }
  0x24   :  { %287 = vmatpush.msra.mxu3 %v266_v34  ;;  %v370_v8 = vld [vmem:[%s660_s7 + $0x1] ss:$0 sm:$0xff] }
  0x25   :  { %214 = vmatpush.msra.mxu2 %v189_v9  ;;  %v375_v23 = vpop.eup %374 }
  0x26   :  { %v225_v24 = vmul.f32 32.0, %v375_v23  ;;  %vm229_vm3 = vweird.f32 %v375_v23  ;;  %288 = vmatpush.msra.mxu3 %v265_v35 }
  0x27   :  { %215 = vmatpush.msra.mxu2 %v188_v10 }
  0x28   :  { %v226_v25 = vsub.f32 1.0, %v225_v24  ;;  %289 = vmatpush.msra.mxu3 %v264_v36 }
  0x2a   :  { %v227_v26 = vmul.f32 %v375_v23, %v226_v25  ;;  %290 = vmatpush.msra.mxu3 %v263_v37 }
  0x2c   :  { %v228_v27 = vadd.f32 %v375_v23, %v227_v26 }
  0x2e   :  { %v230_v28 = vsel %vm229_vm3, %v375_v23, %v228_v27 }
  0x9d   :  { %v153_v11 = vpop.f32.mrf.mxu0 }
  0xa0   :  { %v177_v13 = vpop.f32.mrf.mxu1 }
  0xa1   :  { %v178_v14 = vadd.f32 %v177_v13, %v153_v11  ;;  %v371_v11 = vld [vmem:[%s661_s8 + $0x1] ss:$0 sm:$0xff]  ;;  %v372_v13 = vld [vmem:[%s662_s9] ss:$0 sm:$0xff] }
  0xa3   :  { %v184_v15 = vadd.f32 %v365_v12, %v178_v14 }
  0xa5   :  { %v185_v16 = vmax.f32 %v184_v15, 0.0 }
  0xa7   :  { %351 = vmatmul.msk.f32.vlgmr.msra.gmra.mxu2 %vm196_vm2, %v185_v16 }
 0x12a   :  { %v217_v18 = vpop.f32.mrf.mxu2 }
 0x12b   :  { %v218_v19 = vadd.f32 %v366_v17, %v217_v18  ;;  %v373_v17 = vld [vmem:[#allocation2] ss:$0 sm:$0xff] }
 0x12d   :  { %v220_v20 = vmax.f32 %v218_v19, 0.0 }
 0x12f   :  { %v221_v21 = vsel %vm196_vm2, %v220_v20, 0.0 }
 0x130   :  { %222 = vadd.xlane.f32.xlu0 %v221_v21 }
 0x1a3   :  { %v223_v29 = vpop.xlane.xlu0 %222 }
 0x1a4   :  { %v231_v30 = vmul.f32 %v230_v28, %v223_v29 }
 0x1a6   :  { %v232_v31 = vsub.f32 %v220_v20, %v231_v30 }
 0x1a8   :  { %v233_v32 = vmul.f32 %v232_v31, %v232_v31 }
 0x1aa   :  { %v234_v33 = vsel %vm196_vm2, %v233_v32, 0.0 }
 0x1ab   :  { %235 = vadd.xlane.f32.xlu0 %v234_v33 }
 0x21e   :  { %v236_v38 = vpop.xlane.xlu0 %235 }
 0x21f   :  { %v237_v39 = vmul.f32 %v236_v38, %v230_v28 }
 0x221   :  { %v238_v40 = vadd.f32 1e-05, %v237_v39 }
 0x223   :  { %376 = vrsqrt.f32 %v238_v40  ;;  %vm245_vm5 = vweird.f32 %v238_v40 }
 0x229   :  { %v377_v41 = vpop.eup %376 }
 0x22a   :  { %v240_v42 = vmul.f32 %v377_v41, %v238_v40  ;;  %vm246_vm4 = vweird.f32 %v377_v41 }
 0x22b   :  { %vm247_vm6 = vmor %vm245_vm5, %vm246_vm4 }
 0x22c   :  { %v241_v43 = vmul.f32 %v377_v41, %v240_v42 }
 0x22e   :  { %v242_v44 = vmul.f32 0.5, %v241_v43 }
 0x230   :  { %v243_v45 = vsub.f32 1.5, %v242_v44 }
 0x232   :  { %v244_v46 = vmul.f32 %v377_v41, %v243_v45 }
 0x234   :  { %v248_v48 = vsel %vm247_vm6, %v377_v41, %v244_v46 }
 0x235   :  { %v249_v49 = vmul.f32 %v248_v48, %v232_v31 }
 0x237   :  { %v253_v51 = vmul.f32 %v367_v47, %v249_v49 }
 0x239   :  { %v257_v52 = vadd.f32 %v368_v50, %v253_v51 }
 0x23b   :  { %355 = vmatmul.msk.f32.vlgmr.msra.gmra.mxu3 %vm196_vm2, %v257_v52 }
 0x2be   :  { %v292_v54 = vpop.f32.mrf.mxu3 }
 0x2bf   :  { %v293_v55 = vadd.f32 %v369_v53, %v292_v54 }
 0x2c1   :  { %v295_v56 = vmax.f32 %v293_v55, 0.0 }
 0x2c3   :  { %v296_v57 = vsel %vm196_vm2, %v295_v56, 0.0 }
 0x2c4   :  { %297 = vadd.xlane.f32.xlu1 %v296_v57 }
 0x337   :  { %v298_v58 = vpop.xlane.xlu1 %297 }
 0x338   :  { %v299_v59 = vmul.f32 %v298_v58, %v230_v28 }
 0x33a   :  { %v300_v60 = vsub.f32 %v295_v56, %v299_v59 }
 0x33c   :  { %v301_v61 = vmul.f32 %v300_v60, %v300_v60 }
 0x33e   :  { %v302_v62 = vsel %vm196_vm2, %v301_v61, 0.0 }
 0x33f   :  { %303 = vadd.xlane.f32.xlu1 %v302_v62 }
 0x3b2   :  { %v304_v63 = vpop.xlane.xlu1 %303 }
 0x3b3   :  { %v305_v0 = vmul.f32 %v304_v63, %v230_v28 }
 0x3b5   :  { %v306_v1 = vadd.f32 1e-05, %v305_v0 }
 0x3b7   :  { %378 = vrsqrt.f32 %v306_v1  ;;  %vm313_vm8 = vweird.f32 %v306_v1 }
 0x3bd   :  { %v379_v2 = vpop.eup %378 }
 0x3be   :  { %v308_v3 = vmul.f32 %v379_v2, %v306_v1  ;;  %vm314_vm7 = vweird.f32 %v379_v2 }
 0x3bf   :  { %vm315_vm9 = vmor %vm313_vm8, %vm314_vm7 }
 0x3c0   :  { %v309_v4 = vmul.f32 %v379_v2, %v308_v3 }
 0x3c2   :  { %v310_v5 = vmul.f32 0.5, %v309_v4 }
 0x3c4   :  { %v311_v6 = vsub.f32 1.5, %v310_v5 }
 0x3c6   :  { %v312_v7 = vmul.f32 %v379_v2, %v311_v6 }
 0x3c8   :  { %v316_v9 = vsel %vm315_vm9, %v379_v2, %v312_v7 }
 0x3c9   :  { %v317_v10 = vmul.f32 %v316_v9, %v300_v60 }
 0x3cb   :  { %v321_v12 = vmul.f32 %v370_v8, %v317_v10 }
 0x3cd   :  { %v325_v14 = vadd.f32 %v371_v11, %v321_v12 }
 0x3cf   :  { %v331_v15 = vmul.f32 %v372_v13, %v325_v14 }
 0x3d1   :  { %v332_v16 = vsel %vm196_vm2, %v331_v15, 0.0 }
 0x3d2   :  { %333 = vadd.xlane.f32.xlu2 %v332_v16 }
 0x445   :  { %v334_v18 = vpop.xlane.xlu2 %333 }
 0x446   :  { %v338_v19 = vadd.f32 %v373_v17, %v334_v18 }
 0x448   :  { %340 = vst.msk [vmem:[%s664_s11] sm:$0xff] %vm339_vm10, %v338_v19 }
 0x449   :  { %345 = vsyncpa [#allocation4], 1 }
 0x44a   :  { %346 = vsyncpa [#allocation6], 1 }
 0x44b   :  { %347 = vsyncpa [#allocation9], 1 }
 0x44c   :  { %348 = vsyncpa [#allocation12], 1 }

</bundles_post_ra>
